<compile_context>
chip_gen: v7x
topology: tpu7x:2x2x1
jax: 0.10.0
libtpu: 0.0.40
codegen_flags: <defaults>
</compile_context>

<pallas_src>
import functools

import jax
import jax.numpy as jnp
from jax.experimental import pallas as pl
from jax.experimental.pallas import tpu as pltpu


def _round_up(x: int, m: int) -> int:
    return ((x + m - 1) // m) * m


def calculate_laplacian_with_self_loop(matrix: jnp.ndarray) -> jnp.ndarray:
    """JAX port of the PyTorch helper (runs once at setup time)."""
    matrix = matrix + jnp.eye(matrix.shape[0], dtype=matrix.dtype)
    row_sum = matrix.sum(axis=1)
    d_inv_sqrt = jnp.where(row_sum > 0, row_sum ** -0.5, 0.0)
    d_mat_inv_sqrt = jnp.diag(d_inv_sqrt)
    normalized_laplacian = (matrix @ d_mat_inv_sqrt).T @ d_mat_inv_sqrt
    return normalized_laplacian


def _gcn_kernel(lap_ref, x_ref, w_ref, o_ref, acc_ref):
    """One (row-tile i, K-tile k) grid step.

    lap_ref: (tm, tk)                 streamed laplacian tile
    x_ref:   (tk, BF_in_pad)          lane-dense node features (batch in lanes)
    w_ref:   (BF_in_pad, BF_out_pad)  block-diagonal weights (resident)
    o_ref:   (tm, BF_out_pad)         lane-dense output tile
    acc_ref: (tm, BF_in_pad) f32      VMEM accumulator for (L @ X) over K
    """
    k = pl.program_id(1)

    @pl.when(k == 0)
    def _():
        acc_ref[...] = jnp.zeros_like(acc_ref)

    # Plain 2-D MXU matmul; no per-batch broadcasts, f32 accumulation.
    acc_ref[...] += jnp.dot(lap_ref[...], x_ref[...],
                            preferred_element_type=jnp.float32)

    @pl.when(k == pl.num_programs(1) - 1)
    def _():
        ax = acc_ref[...].astype(w_ref.dtype)
        out = jnp.dot(ax, w_ref[...], preferred_element_type=jnp.float32)
        # Elementwise tanh in f32 (v5e-friendly); cast only on the final store.
        o_ref[...] = jnp.tanh(out).astype(o_ref.dtype)


@functools.partial(jax.jit, static_argnames=("output_dim", "tm", "tk"))
def _gcn_forward(inputs, lap_p, w2d_p, *, output_dim, tm, tk):
    """inputs: (B, N, F_in); lap_p/w2d_p are the pre-padded static operands."""
    B, N, F_in = inputs.shape
    n_row, n_con = lap_p.shape
    bf_in_pad, bf_out_pad = w2d_p.shape
    mm = lap_p.dtype
    out_dtype = inputs.dtype
    bf_in = B * F_in
    bf_out = B * output_dim

    # Exactly the PyTorch reshape: (B, N, F_in) -> (N, B*F_in); batch folded
    # into the lane dimension, zero-padded to the K tile / 128 lanes.
    x2d = jnp.transpose(inputs, (1, 0, 2)).reshape(N, bf_in).astype(mm)
    x_p = jnp.zeros((n_con, bf_in_pad), mm).at[:N, :bf_in].set(x2d)

    grid = (n_row // tm, n_con // tk)

    itemsize = jnp.dtype(mm).itemsize
    out_itemsize = jnp.dtype(out_dtype).itemsize
    vmem_need = (2 * tm * tk * itemsize                 # laplacian (double buffer)
                 + 2 * tk * bf_in_pad * itemsize        # x slab
                 + 2 * bf_in_pad * bf_out_pad * itemsize  # weights
                 + 2 * tm * bf_out_pad * out_itemsize   # output tile
                 + tm * bf_in_pad * 4)                  # f32 accumulator
    vmem_limit = int(min(100 * 2 ** 20, max(2 * vmem_need, 16 * 2 ** 20)))

    cost = pl.CostEstimate(
        flops=2 * n_row * n_con * bf_in_pad + 2 * n_row * bf_in_pad * bf_out_pad,
        transcendentals=n_row * bf_out_pad,
        bytes_accessed=(n_row * n_con + n_con * bf_in_pad
                        + bf_in_pad * bf_out_pad) * itemsize
                       + n_row * bf_out_pad * out_itemsize,
    )

    out_p = pl.pallas_call(
        _gcn_kernel,
        out_shape=jax.ShapeDtypeStruct((n_row, bf_out_pad), out_dtype),
        grid_spec=pltpu.PrefetchScalarGridSpec(
            num_scalar_prefetch=0,
            grid=grid,
            in_specs=[
                # Laplacian: streamed (tm, tk) tiles -- the dominant HBM traffic.
                pl.BlockSpec((tm, tk), lambda i, k: (i, k)),
                # Node features: (tk, BF_in_pad) slab, depends only on k.
                pl.BlockSpec((tk, bf_in_pad), lambda i, k: (k, 0)),
                # Block-diagonal weights: constant index map -> fetched once.
                pl.BlockSpec((bf_in_pad, bf_out_pad), lambda i, k: (0, 0)),
            ],
            out_specs=pl.BlockSpec((tm, bf_out_pad), lambda i, k: (i, 0)),
            scratch_shapes=[pltpu.VMEM((tm, bf_in_pad), jnp.float32)],
        ),
        compiler_params=pltpu.CompilerParams(
            dimension_semantics=("parallel", "arbitrary"),
            vmem_limit_bytes=vmem_limit,
        ),
        cost_estimate=cost,
    )(lap_p, x_p, w2d_p)

    out2d = out_p[:N, :bf_out]                    # strip row / lane padding
    out = out2d.reshape(N, B, output_dim)
    return jnp.transpose(out, (1, 0, 2)).astype(out_dtype)


def make_gcn_forward(laplacian, weights, batch_size, *,
                     row_tile: int = 256, k_tile: int = 512,
                     matmul_dtype=jnp.bfloat16):
    """Pad/cast the static operands ONCE for a fixed graph; returns forward(x).

    matmul_dtype=bfloat16 halves the HBM-bound laplacian stream and runs the
    MXU at native rate (f32 accumulation is kept); use float32 for bit-strict
    comparison against the PyTorch reference.
    """
    N = laplacian.shape[0]
    F_in, F_out = weights.shape
    mm = jnp.dtype(matmul_dtype)

    # Row (grid) tiling: multiple of 8, and >= 2 row tiles when N allows so the
    # "parallel" axis can be sharded across both v7x TensorCores.
    n8 = _round_up(N, 8)
    tm = min(row_tile, n8)
    if n8 >= 16:
        tm = min(tm, _round_up((n8 + 1) // 2, 8))
    n_row = _round_up(N, tm)

    # Contraction (K) tiling: pad only to the K tile, not to the row tile.
    tk = min(k_tile, n8)
    if tk < n8 and tk % 128 != 0:
        tk = max(128, (tk // 128) * 128)      # lane-aligned when K is split
    n_con = _round_up(N, tk)

    bf_in = batch_size * F_in
    bf_out = batch_size * F_out
    bf_in_pad = _round_up(bf_in, 128)
    bf_out_pad = _round_up(bf_out, 128)

    # Padded laplacian (padded rows/cols are zero -> padded outputs are tanh(0)=0).
    lap_p = jnp.zeros((n_row, n_con), mm).at[:N, :N].set(laplacian.astype(mm))

    # Block-diagonal weights so the second GEMM is one lane-dense 2-D matmul:
    #   W2d[b*F_in + f, b*F_out + o] = W[f, o]
    w_blk = jnp.kron(jnp.eye(batch_size, dtype=jnp.float32),
                     weights.astype(jnp.float32)).astype(mm)
    w2d_p = jnp.zeros((bf_in_pad, bf_out_pad), mm).at[:bf_in, :bf_out].set(w_blk)

    def forward(inputs):
        return _gcn_forward(inputs, lap_p, w2d_p,
                            output_dim=F_out, tm=tm, tk=tk)

    return forward


def reference_forward(inputs, laplacian, weights):
    """Pure-JAX reference following the PyTorch forward line by line."""
    B, N, F_in = inputs.shape
    F_out = weights.shape[1]
    x = jnp.transpose(inputs, (1, 0, 2)).reshape(N, B * F_in)
    ax = laplacian @ x
    ax = ax.reshape(N, B, F_in).reshape(N * B, F_in)
    out = jnp.tanh(ax @ weights)
    out = out.reshape(N, B, F_out)
    return jnp.transpose(out, (1, 0, 2))


if __name__ == "__main__":
    # Small, deterministic setup matching the module's forward convention.
    batch = 2
    num_nodes = 8
    input_dim = 16
    output_dim = 32

    key = jax.random.PRNGKey(0)
    k_adj, k_w, k_x = jax.random.split(key, 3)

    a = jax.random.uniform(k_adj, (num_nodes, num_nodes), dtype=jnp.float32)
    adj = (a + a.T) * 0.5
    laplacian = calculate_laplacian_with_self_loop(adj)

    # Xavier-uniform init with tanh gain (5/3), as in reset_parameters().
    gain = 5.0 / 3.0
    bound = gain * jnp.sqrt(6.0 / (input_dim + output_dim))
    weights = jax.random.uniform(k_w, (input_dim, output_dim), dtype=jnp.float32,
                                 minval=-bound, maxval=bound)

    x = jax.random.normal(k_x, (batch, num_nodes, input_dim), dtype=jnp.float32)
    ref = reference_forward(x, laplacian, weights)

    # f32 operands: strict check against the PyTorch-equivalent reference.
    fwd_f32 = make_gcn_forward(laplacian, weights, batch,
                               matmul_dtype=jnp.float32)
    out_f32 = jax.block_until_ready(fwd_f32(x))
    assert out_f32.shape == (batch, num_nodes, output_dim)
    assert jnp.allclose(out_f32, ref, atol=1e-5, rtol=1e-5)

    # Deployment default: bf16 operands (f32 accumulation, f32 tanh).
    fwd_bf16 = make_gcn_forward(laplacian, weights, batch)
    out_bf16 = jax.block_until_ready(fwd_bf16(x))
    assert jnp.allclose(out_bf16, ref, atol=2e-2, rtol=2e-2)

    # Second config: node count not a multiple of the row tile + forced
    # multi-step K axis, exercising padding and the accumulator init/finalize.
    batch2, num_nodes2, f_in2, f_out2 = 3, 144, 16, 8
    k_adj2, k_w2, k_x2 = jax.random.split(jax.random.PRNGKey(1), 3)
    a2 = jax.random.uniform(k_adj2, (num_nodes2, num_nodes2), dtype=jnp.float32)
    lap2 = calculate_laplacian_with_self_loop((a2 + a2.T) * 0.5)
    w2 = jax.random.uniform(k_w2, (f_in2, f_out2), dtype=jnp.float32,
                            minval=-0.5, maxval=0.5)
    x2 = jax.random.normal(k_x2, (batch2, num_nodes2, f_in2), dtype=jnp.float32)
    fwd2 = make_gcn_forward(lap2, w2, batch2, row_tile=72, k_tile=64,
                            matmul_dtype=jnp.float32)
    out2 = jax.block_until_ready(fwd2(x2))
    ref2 = reference_forward(x2, lap2, w2)
    assert out2.shape == (batch2, num_nodes2, f_out2)
    assert jnp.allclose(out2, ref2, atol=1e-5, rtol=1e-5)

    print("KERNEL_OK")
</pallas_src>

<mosaic_0001>
module attributes {stable_mosaic.version = 11 : i64} {
  func.func @_gcn_kernel(%arg0: i32, %arg1: i32, %arg2: memref<8x8xf32, #tpu.memory_space<vmem>>, %arg3: memref<8x128xf32, #tpu.memory_space<vmem>>, %arg4: memref<128x128xf32, #tpu.memory_space<vmem>>, %arg5: memref<8x128xf32, #tpu.memory_space<vmem>>, %arg6: memref<8x128xf32, #tpu.memory_space<vmem>>) attributes {dimension_semantics = [#tpu.dimension_semantics<parallel>, #tpu.dimension_semantics<arbitrary>], iteration_bounds = array<i64: 1, 1>, scalar_prefetch = 0 : i64, scratch_operands = 1 : i64, tpu.core_type = #tpu.core_type<tc>, window_params = [{transform_indices = @transform_0, window_bounds = array<i64: 8, 8>}, {transform_indices = @transform_1, window_bounds = array<i64: 8, 128>}, {pipeline_mode = #tpu.pipeline_mode<synchronous>, transform_indices = @transform_2, window_bounds = array<i64: 128, 128>}, {transform_indices = @transform_3, window_bounds = array<i64: 8, 128>}]} {
    %c0_i32 = arith.constant 0 : i32
    %0 = arith.cmpi eq, %arg1, %c0_i32 : i32
    %1 = arith.extui %0 : i1 to i32
    %c0_i32_0 = arith.constant 0 : i32
    %2 = arith.cmpi ne, %1, %c0_i32_0 : i32
    scf.if %2 {
      %cst_10 = arith.constant 0.000000e+00 : f32
      %12 = vector.broadcast %cst_10 : f32 to vector<8x128xf32>
      %c0_11 = arith.constant 0 : index
      %c0_12 = arith.constant 0 : index
      %13 = vector.load %arg6[%c0_11, %c0_12] : memref<8x128xf32, #tpu.memory_space<vmem>>, vector<8x128xf32>
      tpu.vector_store %arg6[%c0_11, %c0_12], %12 {strides = array<i32>} : memref<8x128xf32, #tpu.memory_space<vmem>>, vector<8x128xf32>,
    } else {
    }
    %c0 = arith.constant 0 : index
    %c0_1 = arith.constant 0 : index
    %3 = vector.load %arg6[%c0, %c0_1] : memref<8x128xf32, #tpu.memory_space<vmem>>, vector<8x128xf32>
    %c0_2 = arith.constant 0 : index
    %c0_3 = arith.constant 0 : index
    %4 = vector.load %arg2[%c0_2, %c0_3] : memref<8x8xf32, #tpu.memory_space<vmem>>, vector<8x8xf32>
    %c0_4 = arith.constant 0 : index
    %c0_5 = arith.constant 0 : index
    %5 = vector.load %arg3[%c0_4, %c0_5] : memref<8x128xf32, #tpu.memory_space<vmem>>, vector<8x128xf32>
    %cst = arith.constant dense<0.000000e+00> : vector<8x128xf32>
    %6 = tpu.matmul %4, %5, %cst {dimension_numbers = #tpu.dot_dimension_numbers<[1], [0], [0], [1], [0, 0, 1, 1], [], []>} : vector<8x8xf32>, vector<8x128xf32>, vector<8x128xf32> -> vector<8x128xf32>
    %7 = arith.addf %3, %6 : vector<8x128xf32>
    %c0_6 = arith.constant 0 : index
    %c0_7 = arith.constant 0 : index
    %8 = vector.load %arg6[%c0_6, %c0_7] : memref<8x128xf32, #tpu.memory_space<vmem>>, vector<8x128xf32>
    tpu.vector_store %arg6[%c0_6, %c0_7], %7 {strides = array<i32>} : memref<8x128xf32, #tpu.memory_space<vmem>>, vector<8x128xf32>,
    %c0_i32_8 = arith.constant 0 : i32
    %9 = arith.cmpi eq, %arg1, %c0_i32_8 : i32
    %10 = arith.extui %9 : i1 to i32
    %c0_i32_9 = arith.constant 0 : i32
    %11 = arith.cmpi ne, %10, %c0_i32_9 : i32
    scf.if %11 {
      %c0_10 = arith.constant 0 : index
      %c0_11 = arith.constant 0 : index
      %12 = vector.load %arg6[%c0_10, %c0_11] : memref<8x128xf32, #tpu.memory_space<vmem>>, vector<8x128xf32>
      %c0_12 = arith.constant 0 : index
      %c0_13 = arith.constant 0 : index
      %13 = vector.load %arg4[%c0_12, %c0_13] : memref<128x128xf32, #tpu.memory_space<vmem>>, vector<128x128xf32>
      %cst_14 = arith.constant dense<0.000000e+00> : vector<8x128xf32>
      %14 = tpu.matmul %12, %13, %cst_14 {dimension_numbers = #tpu.dot_dimension_numbers<[1], [0], [0], [1], [0, 0, 1, 1], [], []>} : vector<8x128xf32>, vector<128x128xf32>, vector<8x128xf32> -> vector<8x128xf32>
      %15 = math.tanh %14 : vector<8x128xf32>
      %c0_15 = arith.constant 0 : index
      %c0_16 = arith.constant 0 : index
      %16 = vector.load %arg5[%c0_15, %c0_16] : memref<8x128xf32, #tpu.memory_space<vmem>>, vector<8x128xf32>
      tpu.vector_store %arg5[%c0_15, %c0_16], %15 {strides = array<i32>} : memref<8x128xf32, #tpu.memory_space<vmem>>, vector<8x128xf32>,
    } else {
    }
    return
  }
  func.func @transform_0(%arg0: i32, %arg1: i32) -> (i32, i32) {
    %c0_i32 = arith.constant 0 : i32
    return %arg0, %arg1 : i32, i32
  }
  func.func @transform_1(%arg0: i32, %arg1: i32) -> (i32, i32) {
    %c0_i32 = arith.constant 0 : i32
    %c0_i32_0 = arith.constant 0 : i32
    return %arg1, %c0_i32 : i32, i32
  }
  func.func @transform_2(%arg0: i32, %arg1: i32) -> (i32, i32) {
    %c0_i32 = arith.constant 0 : i32
    %c0_i32_0 = arith.constant 0 : i32
    %c0_i32_1 = arith.constant 0 : i32
    return %c0_i32, %c0_i32_0 : i32, i32
  }
  func.func @transform_3(%arg0: i32, %arg1: i32) -> (i32, i32) {
    %c0_i32 = arith.constant 0 : i32
    %c0_i32_0 = arith.constant 0 : i32
    return %arg0, %c0_i32 : i32, i32
  }
}

</mosaic_0001>

<bundles_post_ra>
// kernel: _gcn_forward.1
= control target key start
LH: loop header
LB: loop body
LE: loop exit
PB: predicated region body
PF: predicated region fallthrough
CT: control target
= control target key end

     0   :  { %8 = vsyncpa [#allocation4], 0  ;;  %s325_s12 = smov [#allocation3]   ;;  %s372_s0 = inlined_call_operand.vmem [shape: f32[8,8], index: 0, kind: input, shape index: {}]   ;;  %s373_s1 = inlined_call_operand.vmem [shape: f32[8,128], index: 1, kind: input, shape index: {}]   ;;  %s374_s2 = inlined_call_operand.hbm [shape: f32[128,128], index: 2, kind: input, shape index: {}]   ;;  %s375_s3 = inlined_call_operand.vmem [shape: f32[8,128], index: 3, kind: output, shape index: {}]  }
   0x1   :  { %s18_s13 = sshll.u32 %s325_s12, 4  ;;  %s301_s16 = scalar_lea.hbm %s374_s2, 2048  ;;  %s19_s13 = int_to_ptr.vmem [resolvable:$true] %s18_s13 }
   0x2   :  { %p302_p0 = scmp.ne.s32.totalorder %s374_s2, %s301_s16  ;;  %p305_p1 = scmp.lt.u32.totalorder %s301_s16, %s374_s2 }
   0x4   :  { %p307_p2 = pnand %p305_p1, %p302_p0 }
   0x6   :  { %310 = shalt.err (!%p307_p2)
}
   0x7   :  { %s311_s21 = scalar_lea.vmem %s19_s13, 2048  ;;  %p316_p4 = scmp.lt.s32.totalorder %s19_s13, %s19_s13 }
   0x8   :  { %p312_p3 = scmp.ne.s32.totalorder %s19_s13, %s311_s21  ;;  %p317_p5 = scmp.lt.s32.totalorder %s311_s21, %s311_s21 }
   0xa   :  { %p318_p6 = por %p317_p5, %p316_p4 }
   0xc   :  { %p319_p7 = pnand %p318_p6, %p312_p3 }
   0xe   :  { %322 = shalt.err (!%p319_p7)
}
   0xf   :  { %s326_s22 = smov 128   ;;  %s327_s23 = smov 8  }
  0x10   :  { %24 = dma.hbm_to_vmem [thread:$0]  %s374_s2, 2048, %s19_s13, [#allocation4], %s326_s22, %s326_s22, %s327_s23  }
  0x11   :  { %323 = dma.done.wait [#allocation4], 2048  }
  0x12   :  { %324 = vsyncadd [#allocation4], 4294965248  ;;  %v328_v0 = vmov 0.0   ;;  %vm329_vm0 = vmmov 0   ;;  %v330_v1 = vmov 0.0|0.0   ;;  %vm36_vm1 = vcmask 64512  }
  0x13   :  { %229 = vmatprep.subr.mxu0 %v328_v0  ;;  %231 = vmatprep.mubr.msk.f32.mxu0 %vm329_vm0, %v328_v0  ;;  %v35_v2 = vld [vmem:[%s373_s1] sm:$0xff]  ;;  %v117_v5 = vld [vmem:[#allocation3 + $0x8] sm:$0xff]  ;;  %v118_v6 = vld [vmem:[#allocation3 + $0x10] sm:$0xff] }
  0x14   :  { %269 = vmatprep.subr.bf16.mxu1 %v330_v1  ;;  %266 = vmatprep.mubr.msk.f32.mxu1 %vm329_vm0, %v328_v0  ;;  %v34_v3 = vld [vmem:[%s372_s0] sm:$0xff]  ;;  %v119_v7 = vld [vmem:[#allocation3 + $0x18] sm:$0xff]  ;;  %v121_v11 = vld [vmem:[#allocation3 + $0x28] sm:$0xff] }
  0x15   :  { %v116_v4 = vld [vmem:[#allocation3] sm:$0xff]  ;;  %230 = vmatpush3.msra.mxu0 %v35_v2  ;;  %v273_v9 = vpack.c.bf16 %v119_v7, %v118_v6  ;;  %v122_v13 = vld [vmem:[#allocation3 + $0x30] sm:$0xff]  ;;  %v123_v14 = vld [vmem:[#allocation3 + $0x38] sm:$0xff] }
  0x16   :  { %232 = vmatmul.mubr.msk.f32.vlgmr.msra.gmra.mrb[0].mxu0 %vm36_vm1, %v34_v3  ;;  %v270_v8 = vpack.c.bf16 %v117_v5, %v116_v4  ;;  %v120_v10 = vld [vmem:[#allocation3 + $0x20] sm:$0xff]  ;;  %v279_v15 = vpack.c.bf16 %v123_v14, %v122_v13  ;;  %v125_v17 = vld [vmem:[#allocation3 + $0x48] sm:$0xff]  ;;  %v126_v19 = vld [vmem:[#allocation3 + $0x50] sm:$0xff] }
  0x17   :  { %v276_v12 = vpack.c.bf16 %v121_v11, %v120_v10  ;;  %v124_v16 = vld [vmem:[#allocation3 + $0x40] sm:$0xff]  ;;  %v127_v20 = vld [vmem:[#allocation3 + $0x58] sm:$0xff]  ;;  %v129_v23 = vld [vmem:[#allocation3 + $0x68] sm:$0xff] }
  0x18   :  { %271 = vmatpush3.bf16.msra.mxu1 %v270_v8  ;;  %v282_v18 = vpack.c.bf16 %v125_v17, %v124_v16  ;;  %v285_v21 = vpack.c.bf16 %v127_v20, %v126_v19  ;;  %v128_v22 = vld [vmem:[#allocation3 + $0x60] sm:$0xff]  ;;  %v130_v25 = vld [vmem:[#allocation3 + $0x70] sm:$0xff]  ;;  %v131_v26 = vld [vmem:[#allocation3 + $0x78] sm:$0xff] }
  0x19   :  { %272 = vmatprep.subr.bf16.mxu1 %v330_v1  ;;  %v288_v24 = vpack.c.bf16 %v129_v23, %v128_v22  ;;  %v291_v27 = vpack.c.bf16 %v131_v26, %v130_v25 }
  0x1c   :  { %274 = vmatpush3.bf16.msra.mxu1 %v273_v9 }
  0x1d   :  { %275 = vmatprep.subr.bf16.mxu1 %v330_v1 }
  0x20   :  { %277 = vmatpush3.bf16.msra.mxu1 %v276_v12 }
  0x21   :  { %278 = vmatprep.subr.bf16.mxu1 %v330_v1 }
  0x24   :  { %280 = vmatpush3.bf16.msra.mxu1 %v279_v15 }
  0x25   :  { %281 = vmatprep.subr.bf16.mxu1 %v330_v1 }
  0x28   :  { %283 = vmatpush3.bf16.msra.mxu1 %v282_v18 }
  0x29   :  { %284 = vmatprep.subr.bf16.mxu1 %v330_v1 }
  0x2c   :  { %286 = vmatpush3.bf16.msra.mxu1 %v285_v21 }
  0x2d   :  { %287 = vmatprep.subr.bf16.mxu1 %v330_v1 }
  0x30   :  { %289 = vmatpush3.bf16.msra.mxu1 %v288_v24 }
  0x31   :  { %290 = vmatprep.subr.bf16.mxu1 %v330_v1 }
  0x34   :  { %292 = vmatpush3.bf16.msra.mxu1 %v291_v27 }
  0xe9   :  { %v106_v28 = vpop.f32.mrb[0].mxu0 }
  0xea   :  { %v233_v29 = vpop.f32.mrb[1].mxu0  ;;  %267 = vmatmul.mubr.f32.vlgmr.msra.gmra.mrb[0].mxu1 %v106_v28 }
 0x1bd   :  { %v198_v30 = vpop.f32.mrb[0].mxu1 }
 0x1be   :  { %299 = vtanh.f32 %v198_v30  ;;  %v268_v31 = vpop.f32.mrb[1].mxu1 }
 0x1c8   :  { %v300_v32 = vpop.eup %299 }
 0x1c9   :  { %203 = vst [vmem:[%s375_s3] sm:$0xff] %v300_v32 }
 0x1ca   :  { %208 = vsyncpa [#allocation4], 1 }

</bundles_post_ra>
